<compile_context>
chip_gen: v5e
topology: v5e:2x2
jax: 0.10.0
libtpu: 0.0.40
codegen_flags: <defaults>
</compile_context>

<pallas_src>
from functools import partial

import jax
import jax.numpy as jnp
from jax.experimental import pallas as pl
from jax.experimental.pallas import tpu as pltpu


def policy_kernel(x_ref, w1_ref, b1_ref, w2_ref, b2_ref, out_ref):
    # --- affine1 + relu (bf16 operands, f32 accumulate on the MXU) ---------
    h = jnp.dot(x_ref[...], w1_ref[...], preferred_element_type=jnp.float32)
    h = jnp.maximum(h + b1_ref[...], 0.0)            # (TB, Hp) + (1, Hp), ReLU on VPU

    # --- affine2 ------------------------------------------------------------
    s = jnp.dot(h.astype(w2_ref.dtype), w2_ref[...],
                preferred_element_type=jnp.float32)
    s = s + b2_ref[...]                               # padded action cols get -1e30 bias

    # --- softmax over the last (action) axis, numerically stable, exact f32 -
    s = s - jnp.max(s, axis=-1, keepdims=True)
    e = jnp.exp(s)                                    # padded cols -> exp(~-1e30) == 0
    p = e / jnp.sum(e, axis=-1, keepdims=True)        # exact divide: rows sum to 1

    # Store only the real action columns (out_ref last dim == num_actions).
    out_ref[...] = p[:, :out_ref.shape[1]].astype(out_ref.dtype)


def _round_up(x, m):
    return ((x + m - 1) // m) * m


def init_policy_params(key, num_inputs, hidden_size, num_actions):
    """Deterministic init mirroring nn.Linear default (uniform +/- 1/sqrt(fan_in)).
    Weights are stored already transposed: (in_features, out_features)."""
    k1, k2, k3, k4 = jax.random.split(key, 4)
    bound1 = 1.0 / jnp.sqrt(jnp.float32(num_inputs))
    bound2 = 1.0 / jnp.sqrt(jnp.float32(hidden_size))
    w1_t = jax.random.uniform(k1, (num_inputs, hidden_size), jnp.float32,
                              -bound1, bound1)
    b1 = jax.random.uniform(k2, (1, hidden_size), jnp.float32, -bound1, bound1)
    w2_t = jax.random.uniform(k3, (hidden_size, num_actions), jnp.float32,
                              -bound2, bound2)
    b2 = jax.random.uniform(k4, (1, num_actions), jnp.float32, -bound2, bound2)
    return w1_t, b1, w2_t, b2


def pad_policy_params(w1_t, b1, w2_t, b2):
    """One-time prep: lane-pad hidden/action dims to 128 and cast matmul
    weights to bf16 (biases stay f32).  Done OUTSIDE the jitted forward so the
    padding copies are not re-materialized every call."""
    K, H = w1_t.shape
    A = w2_t.shape[1]
    Hp = _round_up(H, 128)
    Ap = _round_up(A, 128)
    w1p = jnp.pad(w1_t, ((0, 0), (0, Hp - H))).astype(jnp.bfloat16)
    b1p = jnp.pad(b1.reshape(1, H), ((0, 0), (0, Hp - H))).astype(jnp.float32)
    w2p = jnp.pad(w2_t, ((0, Hp - H), (0, Ap - A))).astype(jnp.bfloat16)
    # Huge negative bias on padded action columns -> softmax gives them exactly 0.
    b2p = jnp.pad(b2.reshape(1, A), ((0, 0), (0, Ap - A)),
                  constant_values=-1e30).astype(jnp.float32)
    return w1p, b1p, w2p, b2p


@partial(jax.jit, static_argnames=("num_actions",))
def policy_forward(x, w1p, b1p, w2p, b2p, *, num_actions):
    """x: (B, num_inputs) f32; padded params from pad_policy_params.
    Returns (B, num_actions) softmax probabilities (float32)."""
    B, K = x.shape
    Hp = w1p.shape[1]
    Ap = w2p.shape[1]
    A = num_actions

    # ---- batch tiling ------------------------------------------------------
    # Large tiles amortize the ~0.35 us/step pipeline overhead; balanced tiles
    # keep batch padding <= 7 rows per tile; >=2 tiles (when the batch allows)
    # lets v7x shard the "parallel" axis across its two TensorCores.
    TB_MAX = 2048
    Bp = _round_up(B, 8)                              # sublane alignment
    n_tiles = max(pl.cdiv(Bp, TB_MAX), 2 if Bp >= 16 else 1)
    TB = _round_up(pl.cdiv(Bp, n_tiles), 8)
    n_tiles = pl.cdiv(Bp, TB)
    Bp = TB * n_tiles

    # bf16 x halves the dominant input DMA bytes; matmul accumulates in f32.
    xp = jnp.pad(x, ((0, Bp - B), (0, 0))).astype(jnp.bfloat16)

    cost = pl.CostEstimate(
        flops=2 * Bp * (K * Hp + Hp * Ap),
        transcendentals=Bp * Ap,
        bytes_accessed=(Bp * K * 2 + K * Hp * 2 + Hp * Ap * 2
                        + (Hp + Ap) * 4 + Bp * A * 4),
    )

    out = pl.pallas_call(
        policy_kernel,
        out_shape=jax.ShapeDtypeStruct((Bp, A), jnp.float32),
        grid=(n_tiles,),
        in_specs=[
            pl.BlockSpec((TB, K), lambda i: (i, 0)),    # x: tiled over batch
            pl.BlockSpec((K, Hp), lambda i: (0, 0)),    # w1: grid-invariant (VMEM-resident)
            pl.BlockSpec((1, Hp), lambda i: (0, 0)),    # b1
            pl.BlockSpec((Hp, Ap), lambda i: (0, 0)),   # w2
            pl.BlockSpec((1, Ap), lambda i: (0, 0)),    # b2
        ],
        # Output carries only the real action columns: HBM block stays dense,
        # write bytes drop ~16x vs a 128-lane-padded output.
        out_specs=pl.BlockSpec((TB, A), lambda i: (i, 0)),
        compiler_params=pltpu.CompilerParams(
            dimension_semantics=("parallel",)),          # megacore sharding on v7x
        cost_estimate=cost,
    )(xp, w1p, b1p, w2p, b2p)

    return out[:B]


def _reference(x, w1_t, b1, w2_t, b2):
    h = jnp.maximum(x @ w1_t + b1, 0.0)
    s = h @ w2_t + b2
    return jax.nn.softmax(s, axis=-1)


if __name__ == "__main__":
    # Small shapes consistent with the module: Policy(num_inputs=16,
    # hidden_size=32, num_actions=8), batch=4.
    num_inputs, hidden_size, num_actions = 16, 32, 8
    batch = 4

    key = jax.random.PRNGKey(0)
    kx, kx2, kp = jax.random.split(key, 3)
    x = jax.random.normal(kx, (batch, num_inputs), jnp.float32)
    w1_t, b1, w2_t, b2 = init_policy_params(kp, num_inputs, hidden_size,
                                            num_actions)
    w1p, b1p, w2p, b2p = pad_policy_params(w1_t, b1, w2_t, b2)

    probs = policy_forward(x, w1p, b1p, w2p, b2p, num_actions=num_actions)
    probs = jax.block_until_ready(probs)

    # Reference in f32.  Tolerance covers the bf16 input/weight casts inside
    # the kernel (accumulation, biases and softmax are all f32).
    ref = _reference(x, w1_t, b1, w2_t, b2)
    assert probs.shape == (batch, num_actions)
    assert jnp.allclose(probs, ref, atol=1e-2, rtol=1e-2)
    # Exact f32 normalization -> each row sums to 1 tightly.
    assert jnp.allclose(jnp.sum(probs, axis=-1), 1.0, atol=1e-5)

    # Second config exercising the padded-batch / multi-tile path (B=520 ->
    # two balanced tiles of 264 rows with 8 padded rows total).
    batch2 = 520
    x2 = jax.random.normal(kx2, (batch2, num_inputs), jnp.float32)
    probs2 = policy_forward(x2, w1p, b1p, w2p, b2p, num_actions=num_actions)
    probs2 = jax.block_until_ready(probs2)
    ref2 = _reference(x2, w1_t, b1, w2_t, b2)
    assert probs2.shape == (batch2, num_actions)
    assert jnp.allclose(probs2, ref2, atol=1e-2, rtol=1e-2)
    assert jnp.allclose(jnp.sum(probs2, axis=-1), 1.0, atol=1e-5)

    print("KERNEL_OK")
</pallas_src>

<mosaic_0001>
module attributes {stable_mosaic.version = 11 : i64} {
  func.func @policy_kernel(%arg0: i32, %arg1: memref<8x16xbf16, #tpu.memory_space<vmem>>, %arg2: memref<16x128xbf16, #tpu.memory_space<vmem>>, %arg3: memref<1x128xf32, #tpu.memory_space<vmem>>, %arg4: memref<128x128xbf16, #tpu.memory_space<vmem>>, %arg5: memref<1x128xf32, #tpu.memory_space<vmem>>, %arg6: memref<8x8xf32, #tpu.memory_space<vmem>>) attributes {dimension_semantics = [#tpu.dimension_semantics<parallel>], iteration_bounds = array<i64: 1>, scalar_prefetch = 0 : i64, scratch_operands = 0 : i64, tpu.core_type = #tpu.core_type<tc>, window_params = [{transform_indices = @transform_0, window_bounds = array<i64: 8, 16>}, {pipeline_mode = #tpu.pipeline_mode<synchronous>, transform_indices = @transform_1, window_bounds = array<i64: 16, 128>}, {pipeline_mode = #tpu.pipeline_mode<synchronous>, transform_indices = @transform_2, window_bounds = array<i64: 1, 128>}, {pipeline_mode = #tpu.pipeline_mode<synchronous>, transform_indices = @transform_3, window_bounds = array<i64: 128, 128>}, {pipeline_mode = #tpu.pipeline_mode<synchronous>, transform_indices = @transform_4, window_bounds = array<i64: 1, 128>}, {transform_indices = @transform_5, window_bounds = array<i64: 8, 8>}]} {
    %c0 = arith.constant 0 : index
    %c0_0 = arith.constant 0 : index
    %0 = vector.load %arg1[%c0, %c0_0] : memref<8x16xbf16, #tpu.memory_space<vmem>>, vector<8x16xbf16>
    %c0_1 = arith.constant 0 : index
    %c0_2 = arith.constant 0 : index
    %1 = vector.load %arg2[%c0_1, %c0_2] : memref<16x128xbf16, #tpu.memory_space<vmem>>, vector<16x128xbf16>
    %cst = arith.constant dense<0.000000e+00> : vector<8x128xf32>
    %2 = tpu.matmul %0, %1, %cst {dimension_numbers = #tpu.dot_dimension_numbers<[1], [0], [0], [1], [0, 0, 1, 1], [], []>} : vector<8x16xbf16>, vector<16x128xbf16>, vector<8x128xf32> -> vector<8x128xf32>
    %c0_3 = arith.constant 0 : index
    %c0_4 = arith.constant 0 : index
    %3 = vector.load %arg3[%c0_3, %c0_4] : memref<1x128xf32, #tpu.memory_space<vmem>>, vector<1x128xf32>
    %4 = vector.broadcast %3 : vector<1x128xf32> to vector<8x128xf32>
    %5 = arith.addf %2, %4 : vector<8x128xf32>
    %cst_5 = arith.constant 0.000000e+00 : f32
    %6 = vector.broadcast %cst_5 : f32 to vector<8x128xf32>
    %7 = arith.maximumf %5, %6 : vector<8x128xf32>
    %8 = arith.truncf %7 : vector<8x128xf32> to vector<8x128xbf16>
    %c0_6 = arith.constant 0 : index
    %c0_7 = arith.constant 0 : index
    %9 = vector.load %arg4[%c0_6, %c0_7] : memref<128x128xbf16, #tpu.memory_space<vmem>>, vector<128x128xbf16>
    %cst_8 = arith.constant dense<0.000000e+00> : vector<8x128xf32>
    %10 = tpu.matmul %8, %9, %cst_8 {dimension_numbers = #tpu.dot_dimension_numbers<[1], [0], [0], [1], [0, 0, 1, 1], [], []>} : vector<8x128xbf16>, vector<128x128xbf16>, vector<8x128xf32> -> vector<8x128xf32>
    %c0_9 = arith.constant 0 : index
    %c0_10 = arith.constant 0 : index
    %11 = vector.load %arg5[%c0_9, %c0_10] : memref<1x128xf32, #tpu.memory_space<vmem>>, vector<1x128xf32>
    %12 = vector.broadcast %11 : vector<1x128xf32> to vector<8x128xf32>
    %13 = arith.addf %10, %12 : vector<8x128xf32>
    %cst_11 = arith.constant dense<0xFF800000> : vector<8xf32>
    %14 = vector.multi_reduction <maximumf>, %13, %cst_11 [1] : vector<8x128xf32> to vector<8xf32>
    %15 = vector.shape_cast %14 : vector<8xf32> to vector<8x1xf32>
    %16 = vector.broadcast %15 : vector<8x1xf32> to vector<8x128xf32>
    %17 = arith.subf %13, %16 : vector<8x128xf32>
    %18 = math.exp %17 : vector<8x128xf32>
    %cst_12 = arith.constant dense<0.000000e+00> : vector<8xf32>
    %19 = vector.multi_reduction <add>, %18, %cst_12 [1] : vector<8x128xf32> to vector<8xf32>
    %20 = vector.shape_cast %19 : vector<8xf32> to vector<8x1xf32>
    %21 = vector.broadcast %20 : vector<8x1xf32> to vector<8x128xf32>
    %22 = arith.divf %18, %21 : vector<8x128xf32>
    %23 = vector.extract_strided_slice %22 {offsets = [0, 0], sizes = [8, 8], strides = [1, 1]} : vector<8x128xf32> to vector<8x8xf32>
    %c0_13 = arith.constant 0 : index
    %c0_14 = arith.constant 0 : index
    %24 = vector.load %arg6[%c0_13, %c0_14] : memref<8x8xf32, #tpu.memory_space<vmem>>, vector<8x8xf32>
    tpu.vector_store %arg6[%c0_13, %c0_14], %23 {strides = array<i32>} : memref<8x8xf32, #tpu.memory_space<vmem>>, vector<8x8xf32>,
    return
  }
  func.func @transform_0(%arg0: i32) -> (i32, i32) {
    %c0_i32 = arith.constant 0 : i32
    %c0_i32_0 = arith.constant 0 : i32
    return %arg0, %c0_i32 : i32, i32
  }
  func.func @transform_1(%arg0: i32) -> (i32, i32) {
    %c0_i32 = arith.constant 0 : i32
    %c0_i32_0 = arith.constant 0 : i32
    %c0_i32_1 = arith.constant 0 : i32
    return %c0_i32, %c0_i32_0 : i32, i32
  }
  func.func @transform_2(%arg0: i32) -> (i32, i32) {
    %c0_i32 = arith.constant 0 : i32
    %c0_i32_0 = arith.constant 0 : i32
    %c0_i32_1 = arith.constant 0 : i32
    return %c0_i32, %c0_i32_0 : i32, i32
  }
  func.func @transform_3(%arg0: i32) -> (i32, i32) {
    %c0_i32 = arith.constant 0 : i32
    %c0_i32_0 = arith.constant 0 : i32
    %c0_i32_1 = arith.constant 0 : i32
    return %c0_i32, %c0_i32_0 : i32, i32
  }
  func.func @transform_4(%arg0: i32) -> (i32, i32) {
    %c0_i32 = arith.constant 0 : i32
    %c0_i32_0 = arith.constant 0 : i32
    %c0_i32_1 = arith.constant 0 : i32
    return %c0_i32, %c0_i32_0 : i32, i32
  }
  func.func @transform_5(%arg0: i32) -> (i32, i32) {
    %c0_i32 = arith.constant 0 : i32
    %c0_i32_0 = arith.constant 0 : i32
    return %arg0, %c0_i32 : i32, i32
  }
}

</mosaic_0001>

<bundles_post_ra>
// kernel: policy_forward.1
= control target key start
LH: loop header
LB: loop body
LE: loop exit
PB: predicated region body
PF: predicated region fallthrough
CT: control target
= control target key end

     0   :  { %10 = vsyncpa [#allocation3], 0  ;;  %s260_s21 = smov [#allocation2]   ;;  %s261_s23 = smov 64   ;;  %s311_s0 = inlined_call_operand.vmem [shape: bf16[8,16], index: 0, kind: input, shape index: {}]   ;;  %s312_s1 = inlined_call_operand.vmem [shape: bf16[16,128], index: 1, kind: input, shape index: {}]   ;;  %s313_s2 = inlined_call_operand.vmem [shape: f32[1,128], index: 2, kind: input, shape index: {}]   ;;  %s314_s3 = inlined_call_operand.hbm [shape: bf16[128,128], index: 3, kind: input, shape index: {}]   ;;  %s315_s4 = inlined_call_operand.vmem [shape: f32[1,128], index: 4, kind: input, shape index: {}]   ;;  %s316_s5 = inlined_call_operand.vmem [shape: f32[8,8], index: 5, kind: output, shape index: {}]  }
   0x1   :  { %s21_s20 = sshll.u32 %s314_s3, 4  ;;  %s23_s22 = sshll.u32 %s260_s21, 4  ;;  %s22_s20 = int_to_ptr.hbm [resolvable:$true] %s21_s20  ;;  %s24_s22 = int_to_ptr.vmem [resolvable:$true] %s23_s22 }
   0x2   :  { %s262_s24 = smov 4  }
   0x3   :  { %29 = dma.hbm_to_vmem [thread:$0]  %s22_s20, 1024, %s24_s22, [#allocation3], %s261_s23, %s261_s23, %s262_s24  }
   0x4   :  { %258 = dma.done.wait [#allocation3], 1024  }
   0x5   :  { %259 = vsyncadd [#allocation3], 4294966272  ;;  %v216_v0 = vld [vmem:[%s312_s1] sm:$0xff]  ;;  %v224_v1 = vld [vmem:[#allocation2 + $0x38] sm:$0xff]  ;;  %vm50_vm0 = vcmask 130048   ;;  %vm172_vm5 = vcmask 64512  }
   0x6   :  { %61 = vmatpush.bf16.msra.mxu0 %v216_v0  ;;  %v37_v2 = vld [vmem:[%s311_s0] sm:$0xf]  ;;  %137 = vmatpush.bf16.msra.mxu1 %v224_v1  ;;  %v223_v3 = vld [vmem:[#allocation2 + $0x30] sm:$0xff]  ;;  %v222_v4 = vld [vmem:[#allocation2 + $0x28] sm:$0xff] }
   0x7   :  { %v221_v5 = vld [vmem:[#allocation2 + $0x20] sm:$0xff]  ;;  %v220_v6 = vld [vmem:[#allocation2 + $0x18] sm:$0xff]  ;;  %v219_v7 = vld [vmem:[#allocation2 + $0x10] sm:$0xff] }
   0x8   :  { %v218_v8 = vld [vmem:[#allocation2 + $0x8] sm:$0xff]  ;;  %v217_v9 = vld [vmem:[#allocation2] sm:$0xff] }
   0x9   :  { %183 = vmatmul.msk.bf16.vlgmr.msra.gmra.mxu0 %vm50_vm0, %v37_v2  ;;  %v228_v10 = vld [vmem:[%s313_s2] ss:$0 sm:$0xff] }
   0xa   :  { %138 = vmatpush.bf16.msra.mxu1 %v223_v3  ;;  %v229_v16 = vld [vmem:[%s315_s4] ss:$0 sm:$0xff] }
   0xe   :  { %139 = vmatpush.bf16.msra.mxu1 %v222_v4 }
  0x12   :  { %140 = vmatpush.bf16.msra.mxu1 %v221_v5 }
  0x16   :  { %141 = vmatpush.bf16.msra.mxu1 %v220_v6 }
  0x1a   :  { %142 = vmatpush.bf16.msra.mxu1 %v219_v7 }
  0x1e   :  { %143 = vmatpush.bf16.msra.mxu1 %v218_v8 }
  0x22   :  { %144 = vmatpush.bf16.msra.mxu1 %v217_v9 }
  0x86   :  { %v63_v11 = vpop.f32.mrf.mxu0 }
  0x87   :  { %v64_v12 = vadd.f32 %v228_v10, %v63_v11 }
  0x89   :  { %v67_v13 = vmax.f32 %v64_v12, 0.0 }
  0x8b   :  { %v68_v14 = vpack.c.bf16 %v67_v13, %v67_v13 }
  0x8d   :  { %145 = vmatmul.bf16.vlgmr.msra.gmra.mxu1 %v68_v14 }
  0x8e   :  { %v65_v15 = vpop.f32.mrf.mxu0 }
 0x10a   :  { %v146_v17 = vpop.f32.mrf.mxu1 }
 0x10b   :  { %v147_v18 = vadd.f32 %v229_v16, %v146_v17 }
 0x10d   :  { %150 = vmax.xlane.f32.xlu0 %v147_v18 }
 0x112   :  { %v148_v19 = vpop.f32.mrf.mxu1 }
 0x180   :  { %v151_v20 = vpop.xlane.xlu0 %150 }
 0x181   :  { %v152_v21 = vsub.f32 %v147_v18, %v151_v20 }
 0x183   :  { %v153_v22 = vmul.f32 1.442695, %v152_v21 }
 0x185   :  { %230 = vpow2.f32 %v153_v22 }
 0x18b   :  { %v231_v23 = vpop.eup %230 }
 0x18c   :  { %155 = vadd.xlane.f32.xlu0 %v231_v23 }
 0x1ff   :  { %v156_v24 = vpop.xlane.xlu0 %155 }
 0x200   :  { %232 = vrcp.f32 %v156_v24  ;;  %v168_v28 = vand.u32 2147483648, %v156_v24  ;;  %v166_v30 = vand.u32 2147483647, %v156_v24  ;;  %vm162_vm2 = vweird.f32 %v156_v24 }
 0x202   :  { %v169_v32 = vor.u32 1.1754944e-38, %v168_v28  ;;  %vm167_vm4 = vcmp.eq.f32.partialorder %v166_v30, 8.507059e+37 }
 0x206   :  { %v233_v25 = vpop.eup %232 }
 0x207   :  { %v158_v26 = vmul.f32 %v233_v25, %v156_v24  ;;  %vm163_vm1 = vweird.f32 %v233_v25 }
 0x208   :  { %vm164_vm3 = vmor %vm162_vm2, %vm163_vm1 }
 0x209   :  { %v159_v27 = vsub.f32 1.0, %v158_v26 }
 0x20b   :  { %v160_v29 = vmul.f32 %v233_v25, %v159_v27 }
 0x20d   :  { %v161_v31 = vadd.f32 %v233_v25, %v160_v29 }
 0x20f   :  { %v165_v33 = vsel %vm164_vm3, %v233_v25, %v161_v31 }
 0x210   :  { %v170_v34 = vsel %vm167_vm4, %v169_v32, %v165_v33 }
 0x211   :  { %v171_v35 = vmul.f32 %v231_v23, %v170_v34 }
 0x213   :  { %173 = vst.msk [vmem:[%s316_s5] sm:$0xff] %vm172_vm5, %v171_v35 }
 0x214   :  { %178 = vsyncpa [#allocation3], 1 }

</bundles_post_ra>
